<compile_context>
chip_gen: v7x
topology: tpu7x:2x2x1
jax: 0.10.0
libtpu: 0.0.40
codegen_flags: <defaults>
</compile_context>

<pallas_src>
import math
import jax
import jax.numpy as jnp
from jax.experimental import pallas as pl
from jax.experimental.pallas import tpu as pltpu


def _round_up(x: int, m: int) -> int:
    return ((x + m - 1) // m) * m


def _vmem_capacity_bytes() -> int:
    """Generation-aware VMEM size (v5e/v6e: 128 MiB, v7x: 64 MiB per TC)."""
    try:
        cap = int(pltpu.get_tpu_info().vmem_capacity_bytes)
        if cap > 0:
            return cap
    except Exception:
        pass
    return 64 * 1024 * 1024  # conservative default (v7x per-TensorCore)


def _fit_tile(dim: int, cap: int, align: int):
    """Choose a tile for `dim` no larger than `cap`.

    Preference order (minimizes padding waste and HBM re-reads):
      1. dim <= cap          -> one full-dim block, zero padding.
      2. a multiple of `align` <= cap that divides round_up(dim, align)
                             -> pad only to the hardware alignment.
      3. otherwise           -> tile = cap, pad dim up to a multiple of cap.
    Returns (tile, padded_dim).
    """
    cap = max(align, (cap // align) * align)
    if dim <= cap:
        return dim, dim
    aligned = _round_up(dim, align)
    min_tile = max(align, (cap // 4 // align) * align)
    t = cap
    while t >= min_tile:
        if aligned % t == 0:
            return t, aligned
        t -= align
    return cap, _round_up(dim, cap)


# ----------------------------- kernels ------------------------------------ #

def _mm_kernel_acc(x_ref, w_ref, o_ref, acc_ref):
    k = pl.program_id(2)
    prod = jnp.dot(x_ref[...], w_ref[...], preferred_element_type=jnp.float32)

    @pl.when(k == 0)
    def _():
        acc_ref[...] = prod          # first K step: assign (no zero-fill pass)

    @pl.when(k > 0)
    def _():
        acc_ref[...] += prod

    @pl.when(k == pl.num_programs(2) - 1)
    def _():
        o_ref[...] = acc_ref[...].astype(o_ref.dtype)


def _mm_bias_kernel_acc(x_ref, w_ref, b_ref, o_ref, acc_ref):
    k = pl.program_id(2)
    prod = jnp.dot(x_ref[...], w_ref[...], preferred_element_type=jnp.float32)

    @pl.when(k == 0)
    def _():
        acc_ref[...] = prod

    @pl.when(k > 0)
    def _():
        acc_ref[...] += prod

    @pl.when(k == pl.num_programs(2) - 1)
    def _():
        # Bias added exactly once, on the f32 accumulator, before the cast.
        o_ref[...] = (acc_ref[...] + b_ref[...]).astype(o_ref.dtype)


def _mm_kernel_single(x_ref, w_ref, o_ref):
    o_ref[...] = jnp.dot(
        x_ref[...], w_ref[...], preferred_element_type=jnp.float32
    ).astype(o_ref.dtype)


def _mm_bias_kernel_single(x_ref, w_ref, b_ref, o_ref):
    acc = jnp.dot(x_ref[...], w_ref[...], preferred_element_type=jnp.float32)
    o_ref[...] = (acc + b_ref[...]).astype(o_ref.dtype)


# ----------------------------- wrapper ------------------------------------ #

def prepare_my_linear_params(weight, bias=None, compute_dtype=jnp.bfloat16):
    """One-time parameter prep: cast the static weight to the MXU compute dtype
    and the bias to f32, so my_linear() does not re-cast K x N every call."""
    w = weight.astype(compute_dtype)
    b = None if bias is None else bias.astype(jnp.float32)
    return w, b


def my_linear(x, weight, bias=None, *, compute_dtype=None, tm=None, tn=None, tk=None):
    """y = x @ weight (+ bias) as a tiled, pipelined Pallas TPU matmul.

    compute_dtype: MXU operand dtype; defaults to bfloat16 for f32 inputs
    (accumulation is always f32, output keeps x's dtype).
    tm/tn/tk: optional caps on the tile sizes (auto-sized to VMEM otherwise).
    """
    orig_shape = x.shape
    if x.ndim > 2:
        x = x.reshape(-1, orig_shape[-1])
    M, K = x.shape
    K2, N = weight.shape
    assert K == K2, f"shape mismatch: x {x.shape} vs weight {weight.shape}"
    out_dtype = x.dtype

    if compute_dtype is None:
        compute_dtype = jnp.bfloat16 if x.dtype == jnp.float32 else x.dtype
    compute_dtype = jnp.dtype(compute_dtype)
    c_item = compute_dtype.itemsize
    out_item = jnp.dtype(out_dtype).itemsize

    xc = x if x.dtype == compute_dtype else x.astype(compute_dtype)
    wc = weight if weight.dtype == compute_dtype else weight.astype(compute_dtype)
    bc = None
    if bias is not None:
        bc = bias if bias.dtype == jnp.float32 else bias.astype(jnp.float32)

    # ---- tile caps: MXU/HBM friendly defaults, clamped to a VMEM budget ----
    vmem_cap = _vmem_capacity_bytes()
    if c_item <= 2:
        tm_cap, tn_cap, tk_cap = 512, 1024, 2048   # bf16 operands
        m_align = 16
    else:
        tm_cap, tn_cap, tk_cap = 512, 512, 1024    # f32 operands
        m_align = 8
    if tm is not None:
        tm_cap = max(m_align, tm)
    if tn is not None:
        tn_cap = max(128, tn)
    if tk is not None:
        tk_cap = max(128, tk)

    budget = int(0.45 * vmem_cap)   # double-buffered tiles must fit with headroom

    def _footprint(a, b, c):
        # 2x double-buffered inputs + f32 accumulator + 2x output + bias tile
        return (2 * (a * c + c * b) * c_item + a * b * 4
                + 2 * a * b * out_item + 2 * b * 4)

    while _footprint(tm_cap, tn_cap, tk_cap) > budget and tk_cap > 256:
        tk_cap //= 2
    while _footprint(tm_cap, tn_cap, tk_cap) > budget and tn_cap > 256:
        tn_cap //= 2
    while _footprint(tm_cap, tn_cap, tk_cap) > budget and tm_cap > 2 * m_align:
        tm_cap //= 2

    tm_, Mp = _fit_tile(M, tm_cap, m_align)
    tn_, Np = _fit_tile(N, tn_cap, 128)
    tk_, Kp = _fit_tile(K, tk_cap, 128)

    # v7x has 2 TensorCores: give big single-block problems >=2 parallel blocks.
    if (Mp == tm_ and Np == tn_
            and (M * K + K * N) * c_item >= (16 << 20) and N % 256 == 0):
        tn_ = N // 2

    # ---- pad only what alignment/correctness requires (K pads with zeros) ----
    if (Mp, Kp) != (M, K):
        xc = jnp.pad(xc, ((0, Mp - M), (0, Kp - K)))
    if (Kp, Np) != (K, N):
        wc = jnp.pad(wc, ((0, Kp - K), (0, Np - N)))
    if bc is not None:
        if Np != N:
            bc = jnp.pad(bc, ((0, Np - N),))
        bc = bc.reshape(1, Np)

    m_grid, n_grid, k_grid = Mp // tm_, Np // tn_, Kp // tk_
    out_shape = jax.ShapeDtypeStruct((Mp, Np), out_dtype)

    vmem_est = (2 * (tm_ * tk_ + tk_ * tn_) * c_item
                + 2 * tm_ * tn_ * out_item
                + (tm_ * tn_ * 4 if k_grid > 1 else 0)
                + (2 * tn_ * 4 if bc is not None else 0))
    vmem_limit = int(min(max(32 << 20, 2 * vmem_est), int(0.85 * vmem_cap)))

    cost = pl.CostEstimate(
        flops=2 * M * N * K,
        bytes_accessed=(M * K + K * N) * c_item + M * N * out_item
        + (N * 4 if bias is not None else 0),
        transcendentals=0,
    )

    if k_grid == 1:
        # Single K step: no scratch accumulator, dot (+bias) written directly.
        grid = (m_grid, n_grid)
        x_spec = pl.BlockSpec((tm_, Kp), lambda i, j: (i, 0))
        w_spec = pl.BlockSpec((Kp, tn_), lambda i, j: (0, j))
        o_spec = pl.BlockSpec((tm_, tn_), lambda i, j: (i, j))
        b_spec = pl.BlockSpec((1, tn_), lambda i, j: (0, j))
        dims = ("parallel", "parallel")
        scratch = []
        kernel = _mm_bias_kernel_single if bc is not None else _mm_kernel_single
    else:
        grid = (m_grid, n_grid, k_grid)
        x_spec = pl.BlockSpec((tm_, tk_), lambda i, j, k: (i, k))
        w_spec = pl.BlockSpec((tk_, tn_), lambda i, j, k: (k, j))
        o_spec = pl.BlockSpec((tm_, tn_), lambda i, j, k: (i, j))
        b_spec = pl.BlockSpec((1, tn_), lambda i, j, k: (0, j))
        dims = ("parallel", "parallel", "arbitrary")
        scratch = [pltpu.VMEM((tm_, tn_), jnp.float32)]
        kernel = _mm_bias_kernel_acc if bc is not None else _mm_kernel_acc

    in_specs = [x_spec, w_spec] + ([b_spec] if bc is not None else [])
    operands = (xc, wc) + ((bc,) if bc is not None else ())

    out = pl.pallas_call(
        kernel,
        out_shape=out_shape,
        grid_spec=pltpu.PrefetchScalarGridSpec(
            num_scalar_prefetch=0,
            grid=grid,
            in_specs=in_specs,
            out_specs=o_spec,
            scratch_shapes=scratch,
        ),
        compiler_params=pltpu.CompilerParams(
            dimension_semantics=dims,
            vmem_limit_bytes=vmem_limit,
        ),
        cost_estimate=cost,
    )(*operands)

    if (Mp, Np) != (M, N):
        out = out[:M, :N]
    if len(orig_shape) > 2:
        out = out.reshape(*orig_shape[:-1], N)
    return out


def init_my_linear(key, in_features, out_features, with_bias=True, dtype=jnp.float32):
    """Mirror MyLinear.reset_parameters: uniform(-stdv, stdv), stdv = 1/sqrt(in)."""
    stdv = 1.0 / math.sqrt(in_features)
    k_w, k_b = jax.random.split(key)
    weight = jax.random.uniform(
        k_w, (in_features, out_features), dtype=dtype, minval=-stdv, maxval=stdv
    )
    bias = None
    if with_bias:
        bias = jax.random.uniform(
            k_b, (out_features,), dtype=dtype, minval=-stdv, maxval=stdv
        )
    return weight, bias


if __name__ == "__main__":
    key = jax.random.PRNGKey(0)
    k_x, k_p, k_x2, k_p2, k_x3, k_p3 = jax.random.split(key, 6)

    # 1) Small module-like shape (batch=8, in=32, out=16).
    #    Default path: bf16 MXU operands (weight pre-cast once), f32 accumulate.
    batch, in_features, out_features = 8, 32, 16
    x = jax.random.normal(k_x, (batch, in_features), dtype=jnp.float32)
    weight, bias = init_my_linear(k_p, in_features, out_features, with_bias=True)
    w_bf16, b_f32 = prepare_my_linear_params(weight, bias)  # one-time weight cast
    y = jax.block_until_ready(my_linear(x, w_bf16, b_f32))
    y_ref = x @ weight + bias
    assert y.shape == (batch, out_features) and y.dtype == x.dtype
    assert jnp.allclose(y, y_ref, atol=5e-2, rtol=5e-2), "bf16 path mismatch"

    #    Exact f32 compute path on the same shape (tight tolerance).
    y_f32 = jax.block_until_ready(
        my_linear(x, weight, bias, compute_dtype=jnp.float32))
    assert jnp.allclose(y_f32, y_ref, atol=1e-5, rtol=1e-5), "f32 path mismatch"

    # 2) Multi-step K reduction: forces the f32 VMEM accumulator with the
    #    pl.when init/finalize path (tk capped at 128 so K=384 -> 3 steps).
    M2, K2, N2 = 64, 384, 256
    x2 = jax.random.normal(k_x2, (M2, K2), dtype=jnp.float32)
    w2, b2 = init_my_linear(k_p2, K2, N2, with_bias=True)
    y2 = jax.block_until_ready(
        my_linear(x2, w2, b2, compute_dtype=jnp.float32, tk=128))
    y2_ref = x2 @ w2 + b2
    assert jnp.allclose(y2, y2_ref, atol=1e-3, rtol=1e-3), "multi-K path mismatch"

    # 3) No-bias path (module built with with_bias=False).
    y3 = jax.block_until_ready(my_linear(x, w_bf16, None))
    assert jnp.allclose(y3, x @ weight, atol=5e-2, rtol=5e-2), "no-bias mismatch"

    # 4) Non-aligned shapes exercise full-dim (unpadded) blocks.
    x4 = jax.random.normal(k_x3, (5, 33), dtype=jnp.float32)
    w4, b4 = init_my_linear(k_p3, 33, 17, with_bias=True)
    y4 = jax.block_until_ready(my_linear(x4, w4, b4, compute_dtype=jnp.float32))
    assert jnp.allclose(y4, x4 @ w4 + b4, atol=1e-4, rtol=1e-4), "odd-shape mismatch"

    print("KERNEL_OK")
</pallas_src>

<mosaic_0001>
module attributes {stable_mosaic.version = 11 : i64} {
  func.func @_mm_bias_kernel_single(%arg0: i32, %arg1: i32, %arg2: memref<8x32xbf16, #tpu.memory_space<vmem>>, %arg3: memref<32x16xbf16, #tpu.memory_space<vmem>>, %arg4: memref<1x16xf32, #tpu.memory_space<vmem>>, %arg5: memref<8x16xf32, #tpu.memory_space<vmem>>) attributes {dimension_semantics = [#tpu.dimension_semantics<parallel>, #tpu.dimension_semantics<parallel>], iteration_bounds = array<i64: 1, 1>, scalar_prefetch = 0 : i64, scratch_operands = 0 : i64, tpu.core_type = #tpu.core_type<tc>, window_params = [{transform_indices = @transform_0, window_bounds = array<i64: 8, 32>}, {transform_indices = @transform_1, window_bounds = array<i64: 32, 16>}, {transform_indices = @transform_2, window_bounds = array<i64: 1, 16>}, {transform_indices = @transform_3, window_bounds = array<i64: 8, 16>}]} {
    %c0 = arith.constant 0 : index
    %c0_0 = arith.constant 0 : index
    %0 = vector.load %arg2[%c0, %c0_0] : memref<8x32xbf16, #tpu.memory_space<vmem>>, vector<8x32xbf16>
    %c0_1 = arith.constant 0 : index
    %c0_2 = arith.constant 0 : index
    %1 = vector.load %arg3[%c0_1, %c0_2] : memref<32x16xbf16, #tpu.memory_space<vmem>>, vector<32x16xbf16>
    %cst = arith.constant dense<0.000000e+00> : vector<8x16xf32>
    %2 = tpu.matmul %0, %1, %cst {dimension_numbers = #tpu.dot_dimension_numbers<[1], [0], [0], [1], [0, 0, 1, 1], [], []>} : vector<8x32xbf16>, vector<32x16xbf16>, vector<8x16xf32> -> vector<8x16xf32>
    %c0_3 = arith.constant 0 : index
    %c0_4 = arith.constant 0 : index
    %3 = vector.load %arg4[%c0_3, %c0_4] : memref<1x16xf32, #tpu.memory_space<vmem>>, vector<1x16xf32>
    %4 = vector.broadcast %3 : vector<1x16xf32> to vector<8x16xf32>
    %5 = arith.addf %2, %4 : vector<8x16xf32>
    %c0_5 = arith.constant 0 : index
    %c0_6 = arith.constant 0 : index
    %6 = vector.load %arg5[%c0_5, %c0_6] : memref<8x16xf32, #tpu.memory_space<vmem>>, vector<8x16xf32>
    tpu.vector_store %arg5[%c0_5, %c0_6], %5 {strides = array<i32>} : memref<8x16xf32, #tpu.memory_space<vmem>>, vector<8x16xf32>,
    return
  }
  func.func @transform_0(%arg0: i32, %arg1: i32) -> (i32, i32) {
    %c0_i32 = arith.constant 0 : i32
    %c0_i32_0 = arith.constant 0 : i32
    return %arg0, %c0_i32 : i32, i32
  }
  func.func @transform_1(%arg0: i32, %arg1: i32) -> (i32, i32) {
    %c0_i32 = arith.constant 0 : i32
    %c0_i32_0 = arith.constant 0 : i32
    return %c0_i32, %arg1 : i32, i32
  }
  func.func @transform_2(%arg0: i32, %arg1: i32) -> (i32, i32) {
    %c0_i32 = arith.constant 0 : i32
    %c0_i32_0 = arith.constant 0 : i32
    return %c0_i32, %arg1 : i32, i32
  }
  func.func @transform_3(%arg0: i32, %arg1: i32) -> (i32, i32) {
    %c0_i32 = arith.constant 0 : i32
    return %arg0, %arg1 : i32, i32
  }
}

</mosaic_0001>

<bundles_post_ra>
// kernel: tpu_custom_call.1
= control target key start
LH: loop header
LB: loop body
LE: loop exit
PB: predicated region body
PF: predicated region fallthrough
CT: control target
= control target key end

     0   :  { %v144_v1 = vmov 0.0   ;;  %vm145_vm0 = vmmov 0   ;;  %s191_s0 = inlined_call_operand.vmem [shape: bf16[8,32], index: 0, kind: input, shape index: {}]   ;;  %s192_s1 = inlined_call_operand.vmem [shape: bf16[32,16], index: 1, kind: input, shape index: {}]   ;;  %s193_s2 = inlined_call_operand.vmem [shape: f32[1,16], index: 2, kind: input, shape index: {}]   ;;  %s194_s3 = inlined_call_operand.hbm [shape: f32[8,16], index: 3, kind: output, shape index: {}]  }
   0x1   :  { %v118_v0 = vld [vmem:[%s192_s1] sm:$0xff]   ;;  %107 = vmatprep.subr.bf16.mxu0 %v144_v1  ;;  %v119_v2 = vld [vmem:[%s192_s1 + $0x8] sm:$0xff]   ;;  %111 = vmatprep.mubr.msk.bf16.mxu0 %vm145_vm0, %v144_v1 }
   0x2   :  { %108 = vmatpush3.bf16.msra.mxu0 %v118_v0 }
   0x3   :  { %109 = vmatprep.subr.bf16.mxu0 %v144_v1 }
   0x4   :  { %8 = vsyncpa [#allocation3], 0  ;;  %v16_v3 = vld [vmem:[%s191_s0] sm:$0xf]  ;;  %vm40_vm1 = vcmask 261120   ;;  %s146_s20 = smov [#allocation2]  }
   0x5   :  { %v100_v4 = vld [vmem:[%s193_s2] ss:$0 sm:$0xff]  ;;  %s92_s21 = sshll.u32 %s146_s20, 4  ;;  %vm84_vm2 = vcmask 130048   ;;  %s93_s21 = int_to_ptr.vmem [resolvable:$true] %s92_s21 }
   0x6   :  { %110 = vmatpush3.bf16.msra.mxu0 %v119_v2  ;;  %s120_s1 = scalar_lea.vmem %s93_s21, 128  ;;  %p125_p1 = scmp.lt.s32.totalorder %s93_s21, %s93_s21 }
   0x7   :  { %p121_p0 = scmp.ne.s32.totalorder %s93_s21, %s120_s1  ;;  %p126_p2 = scmp.lt.s32.totalorder %s120_s1, %s120_s1 }
   0x9   :  { %112 = vmatmul.mubr.msk.bf16.vlgmr.msra.gmra.mrb[0].mxu0 %vm40_vm1, %v16_v3  ;;  %p127_p3 = por %p126_p2, %p125_p1 }
   0xb   :  { %p128_p4 = pnand %p127_p3, %p121_p0 }
  0xdc   :  { %v78_v5 = vpop.f32.mrb[0].mxu0 }
  0xdd   :  { %v79_v6 = vadd.f32 %v100_v4, %v78_v5  ;;  %v113_v7 = vpop.f32.mrb[1].mxu0 }
  0xde   :  { %v81_v8 = vpop.f32.mrb[2].mxu0 }
  0xdf   :  { %v114_v9 = vpop.f32.mrb[3].mxu0  ;;  %85 = vst.msk [vmem:[#allocation2] sm:$0xff] %vm84_vm2, %v79_v6 }
  0xe0   :  { %131 = shalt.err (!%p128_p4)
}
  0xe1   :  { %s132_s2 = scalar_lea.hbm %s194_s3, 128 }
  0xe2   :  { %p133_p5 = scmp.ne.s32.totalorder %s194_s3, %s132_s2  ;;  %p136_p6 = scmp.lt.u32.totalorder %s132_s2, %s194_s3 }
  0xe4   :  { %p138_p7 = pnand %p136_p6, %p133_p5 }
  0xe6   :  { %141 = shalt.err (!%p138_p7)
}
  0xe7   :  { %95 = dma.vmem_to_hbm [thread:$0]  %s93_s21, 128, %s194_s3, [#allocation3]  }
  0xe8   :  { %142 = dma.done.wait [#allocation3], 128  }
  0xe9   :  { %143 = vsyncadd [#allocation3], 4294967168 }
  0xea   :  { %99 = vsyncpa [#allocation3], 1 }

</bundles_post_ra>
